<compile_context>
chip_gen: v7x
topology: tpu7x:2x2x1
jax: 0.10.0
libtpu: 0.0.40
codegen_flags: <defaults>
</compile_context>

<pallas_src>
import functools

import jax
import jax.numpy as jnp
from jax.experimental import pallas as pl
from jax.experimental.pallas import tpu as pltpu

HP = 128  # hidden size padded to one full 128-lane tile


# ------------------------------------------------------------- fused kernel
def ragru_kernel(x_ref, wih_ref, whh_ref, bih_ref, bhhn_ref, wfc_ref, bfc_ref,
                 out_ref, logit_ref, gi_scr):
    """GRU over time + fused FC/sigmoid epilogue, single invocation.

    x_ref    : (T*B, E)    time-major flattened input, bf16
    wih_ref  : (E, 3*Hp)   W_ih^T, gate g occupies columns [g*Hp, g*Hp+H), bf16
    whh_ref  : (Hp, 3*Hp)  W_hh^T, same column layout, rows >= H zero, f32
    bih_ref  : (1, 3*Hp)   f32; r/z columns already include b_hh[r], b_hh[z]
    bhhn_ref : (1, Hp)     f32; b_hh[n] only (added inside the r*(...) term)
    wfc_ref  : (Hp, C)     W_fc^T, rows >= H zero, f32
    bfc_ref  : (1, C)      f32
    out_ref  : (T*B, Hp)   all hidden states, time-major flattened, f32
    logit_ref: (B, C)      sigmoid(fc(h_T)), f32
    gi_scr   : (T*B, 3*Hp) VMEM scratch for the hoisted input projection, f32
    """
    Hp = whh_ref.shape[0]
    B = logit_ref.shape[0]
    T = x_ref.shape[0] // B
    G = 8 // B            # time steps per 8-sublane-aligned group
    n_groups = T // G

    # Hoisted input projection: one big bf16 MXU matmul for every step at once
    # (biases for r/z already contain the folded b_hh contributions).
    gi_scr[...] = (
        jnp.dot(x_ref[...], wih_ref[...], preferred_element_type=jnp.float32)
        + bih_ref[...])

    bhh_n = bhhn_ref[...]                                   # (1, Hp)

    def tanh_sigmoid(v):                                    # 1 EUP op
        return 0.5 * jnp.tanh(0.5 * v) + 0.5

    def group_step(g, h_prev):                              # h_prev: (B, Hp) f32
        row = pl.multiple_of(g * 8, 8)                      # aligned group base
        gi_grp = gi_scr[pl.ds(row, 8), :]                   # one aligned (8,3Hp) load
        h = h_prev
        outs = []
        for s in range(G):                                  # static unroll
            gi = gi_grp[s * B:(s + 1) * B, :]               # (B, 3*Hp) register view
            # Recurrent matmul kept in f32 (tiny LHS; avoids compounding error).
            gh = jnp.dot(h, whh_ref[...], preferred_element_type=jnp.float32)
            r = tanh_sigmoid(gi[:, :Hp] + gh[:, :Hp])
            z = tanh_sigmoid(gi[:, Hp:2 * Hp] + gh[:, Hp:2 * Hp])
            n = jnp.tanh(gi[:, 2 * Hp:] + r * (gh[:, 2 * Hp:] + bhh_n))
            h = (1.0 - z) * n + z * h
            outs.append(h)
        # One unmasked, lane-dense, sublane-aligned (8, 128) store per group.
        out_ref[pl.ds(row, 8), :] = jnp.concatenate(outs, axis=0)
        return h

    h0 = jnp.zeros((B, Hp), jnp.float32)
    h_last = jax.lax.fori_loop(0, n_groups, group_step, h0)

    # Fused FC + sigmoid epilogue on the final hidden state (no 2nd kernel).
    logit_ref[...] = jax.nn.sigmoid(
        jnp.dot(h_last, wfc_ref[...], preferred_element_type=jnp.float32)
        + bfc_ref[...])


# ----------------------------------------------------------------- wrapper
def ragru_forward(x, params, rnn_hidden):
    """x: (B, T, E) float32, batch-first (as fed to the PyTorch nn.GRU)."""
    B, T, E = x.shape
    Hp = params["w_hh_t"].shape[0]
    C = params["w_fc_t"].shape[1]
    assert 8 % B == 0 and (T * B) % 8 == 0 and T % (8 // B) == 0, \
        "alignment requires B | 8 and T | (8 // B)"

    # Time-major flatten so each GRU step reads/writes B contiguous rows; cast
    # to bf16 once in the wrapper (halves the x DMA, no in-kernel cast).
    x_tmf = jnp.transpose(x, (1, 0, 2)).reshape(T * B, E).astype(jnp.bfloat16)

    out_flat, logits = pl.pallas_call(
        ragru_kernel,
        out_shape=(jax.ShapeDtypeStruct((T * B, Hp), jnp.float32),
                   jax.ShapeDtypeStruct((B, C), jnp.float32)),
        grid_spec=pltpu.PrefetchScalarGridSpec(
            num_scalar_prefetch=0,
            grid=(1,),                                    # single invocation
            in_specs=[
                pl.BlockSpec((T * B, E), lambda i: (0, 0)),
                pl.BlockSpec((E, 3 * Hp), lambda i: (0, 0)),
                pl.BlockSpec((Hp, 3 * Hp), lambda i: (0, 0)),
                pl.BlockSpec((1, 3 * Hp), lambda i: (0, 0)),
                pl.BlockSpec((1, Hp), lambda i: (0, 0)),
                pl.BlockSpec((Hp, C), lambda i: (0, 0)),
                pl.BlockSpec((1, C), lambda i: (0, 0)),
            ],
            out_specs=[
                pl.BlockSpec((T * B, Hp), lambda i: (0, 0)),
                pl.BlockSpec((B, C), lambda i: (0, 0)),
            ],
            scratch_shapes=[pltpu.VMEM((T * B, 3 * Hp), jnp.float32)],
        ),
        compiler_params=pltpu.CompilerParams(
            dimension_semantics=("arbitrary",)),          # serial recurrence
    )(x_tmf, params["w_ih_t"], params["w_hh_t"], params["b_ih"],
      params["b_hh_n"], params["w_fc_t"], params["b_fc"])

    # Back to batch-first, strip the Hp -> H lane padding.
    output1 = jnp.transpose(out_flat.reshape(T, B, Hp), (1, 0, 2))[:, :, :rnn_hidden]
    # TODO(synk): WMSA module source not provided; reshape(T,B,1,49) -> WMSA ->
    # reshape(B,T,49) is treated as identity on its first argument.
    features_g = output1
    return features_g, logits


# ------------------------------------------------------------ param packing
def pack_params(w_ih, w_hh, b_ih, b_hh, w_fc, b_fc):
    """Transpose, zero-pad each gate to HP=128 lanes.

    W_ih is stored bf16 (one-shot input projection); W_hh / FC stay f32
    (recurrent path).  b_hh[r], b_hh[z] are folded into b_ih (exact); b_hh[n]
    is kept separate since it is multiplied by the reset gate.
    """
    H = w_hh.shape[1]
    E = w_ih.shape[1]
    C = w_fc.shape[0]

    def gate_mat_t(w, rows, dtype):
        # w: (3H, D) stacked [r; z; n] -> (rows, 3*HP) with gate g at cols g*HP.
        D = w.shape[1]
        out = jnp.zeros((rows, 3 * HP), jnp.float32)
        for g in range(3):
            out = out.at[:D, g * HP:g * HP + H].set(w[g * H:(g + 1) * H, :].T)
        return out.astype(dtype)

    # Folded input bias: r/z columns get b_ih + b_hh, n column gets b_ih only.
    b_in = jnp.zeros((1, 3 * HP), jnp.float32)
    for g in range(3):
        seg = b_ih[g * H:(g + 1) * H]
        if g < 2:
            seg = seg + b_hh[g * H:(g + 1) * H]
        b_in = b_in.at[0, g * HP:g * HP + H].set(seg)

    b_hh_n = jnp.zeros((1, HP), jnp.float32).at[0, :H].set(b_hh[2 * H:])

    w_fc_t = jnp.zeros((HP, C), jnp.float32).at[:H, :].set(w_fc.T)

    return dict(
        w_ih_t=gate_mat_t(w_ih, E, jnp.bfloat16),
        w_hh_t=gate_mat_t(w_hh, HP, jnp.float32),
        b_ih=b_in,
        b_hh_n=b_hh_n,
        w_fc_t=w_fc_t,
        b_fc=b_fc.reshape(1, C).astype(jnp.float32),
    )


# ------------------------------------------------------- pure-JAX reference
def gru_ref(x, w_ih, w_hh, b_ih, b_hh):
    B, T, E = x.shape
    H = w_hh.shape[1]

    def step(h, x_t):
        gi = x_t @ w_ih.T + b_ih
        gh = h @ w_hh.T + b_hh
        i_r, i_z, i_n = gi[:, :H], gi[:, H:2 * H], gi[:, 2 * H:]
        h_r, h_z, h_n = gh[:, :H], gh[:, H:2 * H], gh[:, 2 * H:]
        r = jax.nn.sigmoid(i_r + h_r)
        z = jax.nn.sigmoid(i_z + h_z)
        n = jnp.tanh(i_n + r * h_n)
        h_new = (1.0 - z) * n + z * h
        return h_new, h_new

    h0 = jnp.zeros((B, H), jnp.float32)
    h_last, outs = jax.lax.scan(step, h0, jnp.transpose(x, (1, 0, 2)))
    return jnp.transpose(outs, (1, 0, 2)), h_last


if __name__ == "__main__":
    # Small shapes consistent with the module's forward (seq scaled 500 -> 8).
    B, T, E, H, C = 2, 8, 49, 49, 4      # batch, seq, embed_dim, rnn_hidden, n_class

    key = jax.random.PRNGKey(0)
    ks = jax.random.split(key, 7)
    k = 1.0 / jnp.sqrt(jnp.float32(H))
    w_ih = jax.random.uniform(ks[0], (3 * H, E), jnp.float32, -k, k)
    w_hh = jax.random.uniform(ks[1], (3 * H, H), jnp.float32, -k, k)
    b_ih = jax.random.uniform(ks[2], (3 * H,), jnp.float32, -k, k)
    b_hh = jax.random.uniform(ks[3], (3 * H,), jnp.float32, -k, k)
    w_fc = jax.random.uniform(ks[4], (C, H), jnp.float32, -k, k)
    b_fc = jax.random.uniform(ks[5], (C,), jnp.float32, -k, k)
    x = jax.random.normal(ks[6], (B, T, E), jnp.float32)

    params = pack_params(w_ih, w_hh, b_ih, b_hh, w_fc, b_fc)

    fwd = jax.jit(functools.partial(ragru_forward, rnn_hidden=H))
    features_g, probs = fwd(x, params)
    jax.block_until_ready((features_g, probs))

    # Sanity check against a pure-JAX f32 reference of the same math.
    # (Tolerance relaxed because the input projection uses bf16 on the MXU;
    #  the recurrent matmul itself is now f32.)
    out_ref_seq, h_ref = gru_ref(x, w_ih, w_hh, b_ih, b_hh)
    probs_ref = jax.nn.sigmoid(h_ref @ w_fc.T + b_fc)
    assert features_g.shape == (B, T, E) and probs.shape == (B, C)
    assert jnp.allclose(features_g, out_ref_seq, atol=2e-2, rtol=2e-2)
    assert jnp.allclose(probs, probs_ref, atol=2e-2, rtol=2e-2)

    print("KERNEL_OK")
</pallas_src>

<mosaic_0001>
module attributes {stable_mosaic.version = 11 : i64} {
  func.func @ragru_kernel(%arg0: i32, %arg1: memref<16x49xbf16, #tpu.memory_space<vmem>>, %arg2: memref<49x384xbf16, #tpu.memory_space<vmem>>, %arg3: memref<128x384xf32, #tpu.memory_space<vmem>>, %arg4: memref<1x384xf32, #tpu.memory_space<vmem>>, %arg5: memref<1x128xf32, #tpu.memory_space<vmem>>, %arg6: memref<128x4xf32, #tpu.memory_space<vmem>>, %arg7: memref<1x4xf32, #tpu.memory_space<vmem>>, %arg8: memref<16x128xf32, #tpu.memory_space<vmem>>, %arg9: memref<2x4xf32, #tpu.memory_space<vmem>>, %arg10: memref<16x384xf32, #tpu.memory_space<vmem>>) attributes {dimension_semantics = [#tpu.dimension_semantics<arbitrary>], iteration_bounds = array<i64: 1>, scalar_prefetch = 0 : i64, scratch_operands = 1 : i64, tpu.core_type = #tpu.core_type<tc>, window_params = [{pipeline_mode = #tpu.pipeline_mode<synchronous>, transform_indices = @transform_0, window_bounds = array<i64: 16, 49>}, {pipeline_mode = #tpu.pipeline_mode<synchronous>, transform_indices = @transform_1, window_bounds = array<i64: 49, 384>}, {pipeline_mode = #tpu.pipeline_mode<synchronous>, transform_indices = @transform_2, window_bounds = array<i64: 128, 384>}, {pipeline_mode = #tpu.pipeline_mode<synchronous>, transform_indices = @transform_3, window_bounds = array<i64: 1, 384>}, {pipeline_mode = #tpu.pipeline_mode<synchronous>, transform_indices = @transform_4, window_bounds = array<i64: 1, 128>}, {pipeline_mode = #tpu.pipeline_mode<synchronous>, transform_indices = @transform_5, window_bounds = array<i64: 128, 4>}, {pipeline_mode = #tpu.pipeline_mode<synchronous>, transform_indices = @transform_6, window_bounds = array<i64: 1, 4>}, {pipeline_mode = #tpu.pipeline_mode<synchronous>, transform_indices = @transform_7, window_bounds = array<i64: 16, 128>}, {pipeline_mode = #tpu.pipeline_mode<synchronous>, transform_indices = @transform_8, window_bounds = array<i64: 2, 4>}]} {
    %c0 = arith.constant 0 : index
    %c0_0 = arith.constant 0 : index
    %0 = vector.load %arg1[%c0, %c0_0] : memref<16x49xbf16, #tpu.memory_space<vmem>>, vector<16x49xbf16>
    %c0_1 = arith.constant 0 : index
    %c0_2 = arith.constant 0 : index
    %1 = vector.load %arg2[%c0_1, %c0_2] : memref<49x384xbf16, #tpu.memory_space<vmem>>, vector<49x384xbf16>
    %cst = arith.constant dense<0.000000e+00> : vector<16x384xf32>
    %2 = tpu.matmul %0, %1, %cst {dimension_numbers = #tpu.dot_dimension_numbers<[1], [0], [0], [1], [0, 0, 1, 1], [], []>} : vector<16x49xbf16>, vector<49x384xbf16>, vector<16x384xf32> -> vector<16x384xf32>
    %c0_3 = arith.constant 0 : index
    %c0_4 = arith.constant 0 : index
    %3 = vector.load %arg4[%c0_3, %c0_4] : memref<1x384xf32, #tpu.memory_space<vmem>>, vector<1x384xf32>
    %4 = vector.broadcast %3 : vector<1x384xf32> to vector<16x384xf32>
    %5 = arith.addf %2, %4 : vector<16x384xf32>
    %c0_5 = arith.constant 0 : index
    %c0_6 = arith.constant 0 : index
    %6 = vector.load %arg10[%c0_5, %c0_6] : memref<16x384xf32, #tpu.memory_space<vmem>>, vector<16x384xf32>
    tpu.vector_store %arg10[%c0_5, %c0_6], %5 {strides = array<i32>} : memref<16x384xf32, #tpu.memory_space<vmem>>, vector<16x384xf32>,
    %c0_7 = arith.constant 0 : index
    %c0_8 = arith.constant 0 : index
    %7 = vector.load %arg5[%c0_7, %c0_8] : memref<1x128xf32, #tpu.memory_space<vmem>>, vector<1x128xf32>
    %cst_9 = arith.constant 0.000000e+00 : f32
    %8 = vector.broadcast %cst_9 : f32 to vector<2x128xf32>
    %c0_i32 = arith.constant 0 : i32
    %c2_i32 = arith.constant 2 : i32
    %9 = arith.addi %c0_i32, %c2_i32 : i32
    %c1_i32 = arith.constant 1 : i32
    %10 = scf.for %arg11 = %c0_i32 to %9 step %c1_i32 iter_args(%arg12 = %8) -> (vector<2x128xf32>)  : i32 {
      %c8_i32 = arith.constant 8 : i32
      %22 = arith.muli %arg11, %c8_i32 : i32
      %23 = tpu.assume_multiple %22, 8 : i32
      %24 = arith.index_cast %23 : i32 to index
      %c0_19 = arith.constant 0 : index
      %25 = vector.load %arg10[%24, %c0_19] : memref<16x384xf32, #tpu.memory_space<vmem>>, vector<8x384xf32>
      %26 = vector.extract_strided_slice %25 {offsets = [0, 0], sizes = [2, 384], strides = [1, 1]} : vector<8x384xf32> to vector<2x384xf32>
      %c0_20 = arith.constant 0 : index
      %c0_21 = arith.constant 0 : index
      %27 = vector.load %arg3[%c0_20, %c0_21] : memref<128x384xf32, #tpu.memory_space<vmem>>, vector<128x384xf32>
      %cst_22 = arith.constant dense<0.000000e+00> : vector<2x384xf32>
      %28 = tpu.matmul %arg12, %27, %cst_22 {dimension_numbers = #tpu.dot_dimension_numbers<[1], [0], [0], [1], [0, 0, 1, 1], [], []>} : vector<2x128xf32>, vector<128x384xf32>, vector<2x384xf32> -> vector<2x384xf32>
      %29 = vector.extract_strided_slice %26 {offsets = [0, 0], sizes = [2, 128], strides = [1, 1]} : vector<2x384xf32> to vector<2x128xf32>
      %30 = vector.extract_strided_slice %28 {offsets = [0, 0], sizes = [2, 128], strides = [1, 1]} : vector<2x384xf32> to vector<2x128xf32>
      %31 = arith.addf %29, %30 : vector<2x128xf32>
      %cst_23 = arith.constant 5.000000e-01 : f32
      %32 = vector.broadcast %cst_23 : f32 to vector<2x128xf32>
      %33 = arith.mulf %32, %31 : vector<2x128xf32>
      %34 = math.tanh %33 : vector<2x128xf32>
      %cst_24 = arith.constant 5.000000e-01 : f32
      %35 = vector.broadcast %cst_24 : f32 to vector<2x128xf32>
      %36 = arith.mulf %35, %34 : vector<2x128xf32>
      %cst_25 = arith.constant 5.000000e-01 : f32
      %37 = vector.broadcast %cst_25 : f32 to vector<2x128xf32>
      %38 = arith.addf %36, %37 : vector<2x128xf32>
      %39 = vector.extract_strided_slice %26 {offsets = [0, 128], sizes = [2, 128], strides = [1, 1]} : vector<2x384xf32> to vector<2x128xf32>
      %40 = vector.extract_strided_slice %28 {offsets = [0, 128], sizes = [2, 128], strides = [1, 1]} : vector<2x384xf32> to vector<2x128xf32>
      %41 = arith.addf %39, %40 : vector<2x128xf32>
      %cst_26 = arith.constant 5.000000e-01 : f32
      %42 = vector.broadcast %cst_26 : f32 to vector<2x128xf32>
      %43 = arith.mulf %42, %41 : vector<2x128xf32>
      %44 = math.tanh %43 : vector<2x128xf32>
      %cst_27 = arith.constant 5.000000e-01 : f32
      %45 = vector.broadcast %cst_27 : f32 to vector<2x128xf32>
      %46 = arith.mulf %45, %44 : vector<2x128xf32>
      %cst_28 = arith.constant 5.000000e-01 : f32
      %47 = vector.broadcast %cst_28 : f32 to vector<2x128xf32>
      %48 = arith.addf %46, %47 : vector<2x128xf32>
      %49 = vector.extract_strided_slice %26 {offsets = [0, 256], sizes = [2, 128], strides = [1, 1]} : vector<2x384xf32> to vector<2x128xf32>
      %50 = vector.extract_strided_slice %28 {offsets = [0, 256], sizes = [2, 128], strides = [1, 1]} : vector<2x384xf32> to vector<2x128xf32>
      %51 = vector.broadcast %7 : vector<1x128xf32> to vector<2x128xf32>
      %52 = arith.addf %50, %51 : vector<2x128xf32>
      %53 = arith.mulf %38, %52 : vector<2x128xf32>
      %54 = arith.addf %49, %53 : vector<2x128xf32>
      %55 = math.tanh %54 : vector<2x128xf32>
      %cst_29 = arith.constant 1.000000e+00 : f32
      %56 = vector.broadcast %cst_29 : f32 to vector<2x128xf32>
      %57 = arith.subf %56, %48 : vector<2x128xf32>
      %58 = arith.mulf %57, %55 : vector<2x128xf32>
      %59 = arith.mulf %48, %arg12 : vector<2x128xf32>
      %60 = arith.addf %58, %59 : vector<2x128xf32>
      %61 = vector.extract_strided_slice %25 {offsets = [2, 0], sizes = [2, 384], strides = [1, 1]} : vector<8x384xf32> to vector<2x384xf32>
      %c0_30 = arith.constant 0 : index
      %c0_31 = arith.constant 0 : index
      %62 = vector.load %arg3[%c0_30, %c0_31] : memref<128x384xf32, #tpu.memory_space<vmem>>, vector<128x384xf32>
      %cst_32 = arith.constant dense<0.000000e+00> : vector<2x384xf32>
      %63 = tpu.matmul %60, %62, %cst_32 {dimension_numbers = #tpu.dot_dimension_numbers<[1], [0], [0], [1], [0, 0, 1, 1], [], []>} : vector<2x128xf32>, vector<128x384xf32>, vector<2x384xf32> -> vector<2x384xf32>
      %64 = vector.extract_strided_slice %61 {offsets = [0, 0], sizes = [2, 128], strides = [1, 1]} : vector<2x384xf32> to vector<2x128xf32>
      %65 = vector.extract_strided_slice %63 {offsets = [0, 0], sizes = [2, 128], strides = [1, 1]} : vector<2x384xf32> to vector<2x128xf32>
      %66 = arith.addf %64, %65 : vector<2x128xf32>
      %cst_33 = arith.constant 5.000000e-01 : f32
      %67 = vector.broadcast %cst_33 : f32 to vector<2x128xf32>
      %68 = arith.mulf %67, %66 : vector<2x128xf32>
      %69 = math.tanh %68 : vector<2x128xf32>
      %cst_34 = arith.constant 5.000000e-01 : f32
      %70 = vector.broadcast %cst_34 : f32 to vector<2x128xf32>
      %71 = arith.mulf %70, %69 : vector<2x128xf32>
      %cst_35 = arith.constant 5.000000e-01 : f32
      %72 = vector.broadcast %cst_35 : f32 to vector<2x128xf32>
      %73 = arith.addf %71, %72 : vector<2x128xf32>
      %74 = vector.extract_strided_slice %61 {offsets = [0, 128], sizes = [2, 128], strides = [1, 1]} : vector<2x384xf32> to vector<2x128xf32>
      %75 = vector.extract_strided_slice %63 {offsets = [0, 128], sizes = [2, 128], strides = [1, 1]} : vector<2x384xf32> to vector<2x128xf32>
      %76 = arith.addf %74, %75 : vector<2x128xf32>
      %cst_36 = arith.constant 5.000000e-01 : f32
      %77 = vector.broadcast %cst_36 : f32 to vector<2x128xf32>
      %78 = arith.mulf %77, %76 : vector<2x128xf32>
      %79 = math.tanh %78 : vector<2x128xf32>
      %cst_37 = arith.constant 5.000000e-01 : f32
      %80 = vector.broadcast %cst_37 : f32 to vector<2x128xf32>
      %81 = arith.mulf %80, %79 : vector<2x128xf32>
      %cst_38 = arith.constant 5.000000e-01 : f32
      %82 = vector.broadcast %cst_38 : f32 to vector<2x128xf32>
      %83 = arith.addf %81, %82 : vector<2x128xf32>
      %84 = vector.extract_strided_slice %61 {offsets = [0, 256], sizes = [2, 128], strides = [1, 1]} : vector<2x384xf32> to vector<2x128xf32>
      %85 = vector.extract_strided_slice %63 {offsets = [0, 256], sizes = [2, 128], strides = [1, 1]} : vector<2x384xf32> to vector<2x128xf32>
      %86 = vector.broadcast %7 : vector<1x128xf32> to vector<2x128xf32>
      %87 = arith.addf %85, %86 : vector<2x128xf32>
      %88 = arith.mulf %73, %87 : vector<2x128xf32>
      %89 = arith.addf %84, %88 : vector<2x128xf32>
      %90 = math.tanh %89 : vector<2x128xf32>
      %cst_39 = arith.constant 1.000000e+00 : f32
      %91 = vector.broadcast %cst_39 : f32 to vector<2x128xf32>
      %92 = arith.subf %91, %83 : vector<2x128xf32>
      %93 = arith.mulf %92, %90 : vector<2x128xf32>
      %94 = arith.mulf %83, %60 : vector<2x128xf32>
      %95 = arith.addf %93, %94 : vector<2x128xf32>
      %96 = vector.extract_strided_slice %25 {offsets = [4, 0], sizes = [2, 384], strides = [1, 1]} : vector<8x384xf32> to vector<2x384xf32>
      %c0_40 = arith.constant 0 : index
      %c0_41 = arith.constant 0 : index
      %97 = vector.load %arg3[%c0_40, %c0_41] : memref<128x384xf32, #tpu.memory_space<vmem>>, vector<128x384xf32>
      %cst_42 = arith.constant dense<0.000000e+00> : vector<2x384xf32>
      %98 = tpu.matmul %95, %97, %cst_42 {dimension_numbers = #tpu.dot_dimension_numbers<[1], [0], [0], [1], [0, 0, 1, 1], [], []>} : vector<2x128xf32>, vector<128x384xf32>, vector<2x384xf32> -> vector<2x384xf32>
      %99 = vector.extract_strided_slice %96 {offsets = [0, 0], sizes = [2, 128], strides = [1, 1]} : vector<2x384xf32> to vector<2x128xf32>
      %100 = vector.extract_strided_slice %98 {offsets = [0, 0], sizes = [2, 128], strides = [1, 1]} : vector<2x384xf32> to vector<2x128xf32>
      %101 = arith.addf %99, %100 : vector<2x128xf32>
      %cst_43 = arith.constant 5.000000e-01 : f32
      %102 = vector.broadcast %cst_43 : f32 to vector<2x128xf32>
      %103 = arith.mulf %102, %101 : vector<2x128xf32>
      %104 = math.tanh %103 : vector<2x128xf32>
      %cst_44 = arith.constant 5.000000e-01 : f32
      %105 = vector.broadcast %cst_44 : f32 to vector<2x128xf32>
      %106 = arith.mulf %105, %104 : vector<2x128xf32>
      %cst_45 = arith.constant 5.000000e-01 : f32
      %107 = vector.broadcast %cst_45 : f32 to vector<2x128xf32>
      %108 = arith.addf %106, %107 : vector<2x128xf32>
      %109 = vector.extract_strided_slice %96 {offsets = [0, 128], sizes = [2, 128], strides = [1, 1]} : vector<2x384xf32> to vector<2x128xf32>
      %110 = vector.extract_strided_slice %98 {offsets = [0, 128], sizes = [2, 128], strides = [1, 1]} : vector<2x384xf32> to vector<2x128xf32>
      %111 = arith.addf %109, %110 : vector<2x128xf32>
      %cst_46 = arith.constant 5.000000e-01 : f32
      %112 = vector.broadcast %cst_46 : f32 to vector<2x128xf32>
      %113 = arith.mulf %112, %111 : vector<2x128xf32>
      %114 = math.tanh %113 : vector<2x128xf32>
      %cst_47 = arith.constant 5.000000e-01 : f32
      %115 = vector.broadcast %cst_47 : f32 to vector<2x128xf32>
      %116 = arith.mulf %115, %114 : vector<2x128xf32>
      %cst_48 = arith.constant 5.000000e-01 : f32
      %117 = vector.broadcast %cst_48 : f32 to vector<2x128xf32>
      %118 = arith.addf %116, %117 : vector<2x128xf32>
      %119 = vector.extract_strided_slice %96 {offsets = [0, 256], sizes = [2, 128], strides = [1, 1]} : vector<2x384xf32> to vector<2x128xf32>
      %120 = vector.extract_strided_slice %98 {offsets = [0, 256], sizes = [2, 128], strides = [1, 1]} : vector<2x384xf32> to vector<2x128xf32>
      %121 = vector.broadcast %7 : vector<1x128xf32> to vector<2x128xf32>
      %122 = arith.addf %120, %121 : vector<2x128xf32>
      %123 = arith.mulf %108, %122 : vector<2x128xf32>
      %124 = arith.addf %119, %123 : vector<2x128xf32>
      %125 = math.tanh %124 : vector<2x128xf32>
      %cst_49 = arith.constant 1.000000e+00 : f32
      %126 = vector.broadcast %cst_49 : f32 to vector<2x128xf32>
      %127 = arith.subf %126, %118 : vector<2x128xf32>
      %128 = arith.mulf %127, %125 : vector<2x128xf32>
      %129 = arith.mulf %118, %95 : vector<2x128xf32>
      %130 = arith.addf %128, %129 : vector<2x128xf32>
      %131 = vector.extract_strided_slice %25 {offsets = [6, 0], sizes = [2, 384], strides = [1, 1]} : vector<8x384xf32> to vector<2x384xf32>
      %c0_50 = arith.constant 0 : index
      %c0_51 = arith.constant 0 : index
      %132 = vector.load %arg3[%c0_50, %c0_51] : memref<128x384xf32, #tpu.memory_space<vmem>>, vector<128x384xf32>
      %cst_52 = arith.constant dense<0.000000e+00> : vector<2x384xf32>
      %133 = tpu.matmul %130, %132, %cst_52 {dimension_numbers = #tpu.dot_dimension_numbers<[1], [0], [0], [1], [0, 0, 1, 1], [], []>} : vector<2x128xf32>, vector<128x384xf32>, vector<2x384xf32> -> vector<2x384xf32>
      %134 = vector.extract_strided_slice %131 {offsets = [0, 0], sizes = [2, 128], strides = [1, 1]} : vector<2x384xf32> to vector<2x128xf32>
      %135 = vector.extract_strided_slice %133 {offsets = [0, 0], sizes = [2, 128], strides = [1, 1]} : vector<2x384xf32> to vector<2x128xf32>
      %136 = arith.addf %134, %135 : vector<2x128xf32>
      %cst_53 = arith.constant 5.000000e-01 : f32
      %137 = vector.broadcast %cst_53 : f32 to vector<2x128xf32>
      %138 = arith.mulf %137, %136 : vector<2x128xf32>
      %139 = math.tanh %138 : vector<2x128xf32>
      %cst_54 = arith.constant 5.000000e-01 : f32
      %140 = vector.broadcast %cst_54 : f32 to vector<2x128xf32>
      %141 = arith.mulf %140, %139 : vector<2x128xf32>
      %cst_55 = arith.constant 5.000000e-01 : f32
      %142 = vector.broadcast %cst_55 : f32 to vector<2x128xf32>
      %143 = arith.addf %141, %142 : vector<2x128xf32>
      %144 = vector.extract_strided_slice %131 {offsets = [0, 128], sizes = [2, 128], strides = [1, 1]} : vector<2x384xf32> to vector<2x128xf32>
      %145 = vector.extract_strided_slice %133 {offsets = [0, 128], sizes = [2, 128], strides = [1, 1]} : vector<2x384xf32> to vector<2x128xf32>
      %146 = arith.addf %144, %145 : vector<2x128xf32>
      %cst_56 = arith.constant 5.000000e-01 : f32
      %147 = vector.broadcast %cst_56 : f32 to vector<2x128xf32>
      %148 = arith.mulf %147, %146 : vector<2x128xf32>
      %149 = math.tanh %148 : vector<2x128xf32>
      %cst_57 = arith.constant 5.000000e-01 : f32
      %150 = vector.broadcast %cst_57 : f32 to vector<2x128xf32>
      %151 = arith.mulf %150, %149 : vector<2x128xf32>
      %cst_58 = arith.constant 5.000000e-01 : f32
      %152 = vector.broadcast %cst_58 : f32 to vector<2x128xf32>
      %153 = arith.addf %151, %152 : vector<2x128xf32>
      %154 = vector.extract_strided_slice %131 {offsets = [0, 256], sizes = [2, 128], strides = [1, 1]} : vector<2x384xf32> to vector<2x128xf32>
      %155 = vector.extract_strided_slice %133 {offsets = [0, 256], sizes = [2, 128], strides = [1, 1]} : vector<2x384xf32> to vector<2x128xf32>
      %156 = vector.broadcast %7 : vector<1x128xf32> to vector<2x128xf32>
      %157 = arith.addf %155, %156 : vector<2x128xf32>
      %158 = arith.mulf %143, %157 : vector<2x128xf32>
      %159 = arith.addf %154, %158 : vector<2x128xf32>
      %160 = math.tanh %159 : vector<2x128xf32>
      %cst_59 = arith.constant 1.000000e+00 : f32
      %161 = vector.broadcast %cst_59 : f32 to vector<2x128xf32>
      %162 = arith.subf %161, %153 : vector<2x128xf32>
      %163 = arith.mulf %162, %160 : vector<2x128xf32>
      %164 = arith.mulf %153, %130 : vector<2x128xf32>
      %165 = arith.addf %163, %164 : vector<2x128xf32>
      %166 = tpu.concatenate %60, %95, %130, %165 in 0 : vector<2x128xf32>, vector<2x128xf32>, vector<2x128xf32>, vector<2x128xf32> -> vector<8x128xf32>
      %167 = arith.index_cast %23 : i32 to index
      %c0_60 = arith.constant 0 : index
      %168 = vector.load %arg8[%167, %c0_60] : memref<16x128xf32, #tpu.memory_space<vmem>>, vector<8x128xf32>
      tpu.vector_store %arg8[%167, %c0_60], %166 {strides = array<i32>} : memref<16x128xf32, #tpu.memory_space<vmem>>, vector<8x128xf32>,
      scf.yield %165 : vector<2x128xf32>
    }
    %c2_i32_10 = arith.constant 2 : i32
    %c0_11 = arith.constant 0 : index
    %c0_12 = arith.constant 0 : index
    %11 = vector.load %arg6[%c0_11, %c0_12] : memref<128x4xf32, #tpu.memory_space<vmem>>, vector<128x4xf32>
    %cst_13 = arith.constant dense<0.000000e+00> : vector<2x4xf32>
    %12 = tpu.matmul %10, %11, %cst_13 {dimension_numbers = #tpu.dot_dimension_numbers<[1], [0], [0], [1], [0, 0, 1, 1], [], []>} : vector<2x128xf32>, vector<128x4xf32>, vector<2x4xf32> -> vector<2x4xf32>
    %c0_14 = arith.constant 0 : index
    %c0_15 = arith.constant 0 : index
    %13 = vector.load %arg7[%c0_14, %c0_15] : memref<1x4xf32, #tpu.memory_space<vmem>>, vector<1x4xf32>
    %14 = vector.broadcast %13 : vector<1x4xf32> to vector<2x4xf32>
    %15 = arith.addf %12, %14 : vector<2x4xf32>
    %16 = arith.negf %15 : vector<2x4xf32>
    %17 = math.exp %16 : vector<2x4xf32>
    %cst_16 = arith.constant 1.000000e+00 : f32
    %18 = vector.broadcast %cst_16 : f32 to vector<2x4xf32>
    %19 = arith.addf %18, %17 : vector<2x4xf32>
    %20 = arith.divf %18, %19 : vector<2x4xf32>
    %c0_17 = arith.constant 0 : index
    %c0_18 = arith.constant 0 : index
    %21 = vector.load %arg9[%c0_17, %c0_18] : memref<2x4xf32, #tpu.memory_space<vmem>>, vector<2x4xf32>
    tpu.vector_store %arg9[%c0_17, %c0_18], %20 {strides = array<i32>} : memref<2x4xf32, #tpu.memory_space<vmem>>, vector<2x4xf32>,
    return
  }
  func.func @transform_0(%arg0: i32) -> (i32, i32) {
    %c0_i32 = arith.constant 0 : i32
    %c0_i32_0 = arith.constant 0 : i32
    %c0_i32_1 = arith.constant 0 : i32
    return %c0_i32, %c0_i32_0 : i32, i32
  }
  func.func @transform_1(%arg0: i32) -> (i32, i32) {
    %c0_i32 = arith.constant 0 : i32
    %c0_i32_0 = arith.constant 0 : i32
    %c0_i32_1 = arith.constant 0 : i32
    return %c0_i32, %c0_i32_0 : i32, i32
  }
  func.func @transform_2(%arg0: i32) -> (i32, i32) {
    %c0_i32 = arith.constant 0 : i32
    %c0_i32_0 = arith.constant 0 : i32
    %c0_i32_1 = arith.constant 0 : i32
    return %c0_i32, %c0_i32_0 : i32, i32
  }
  func.func @transform_3(%arg0: i32) -> (i32, i32) {
    %c0_i32 = arith.constant 0 : i32
    %c0_i32_0 = arith.constant 0 : i32
    %c0_i32_1 = arith.constant 0 : i32
    return %c0_i32, %c0_i32_0 : i32, i32
  }
  func.func @transform_4(%arg0: i32) -> (i32, i32) {
    %c0_i32 = arith.constant 0 : i32
    %c0_i32_0 = arith.constant 0 : i32
    %c0_i32_1 = arith.constant 0 : i32
    return %c0_i32, %c0_i32_0 : i32, i32
  }
  func.func @transform_5(%arg0: i32) -> (i32, i32) {
    %c0_i32 = arith.constant 0 : i32
    %c0_i32_0 = arith.constant 0 : i32
    %c0_i32_1 = arith.constant 0 : i32
    return %c0_i32, %c0_i32_0 : i32, i32
  }
  func.func @transform_6(%arg0: i32) -> (i32, i32) {
    %c0_i32 = arith.constant 0 : i32
    %c0_i32_0 = arith.constant 0 : i32
    %c0_i32_1 = arith.constant 0 : i32
    return %c0_i32, %c0_i32_0 : i32, i32
  }
  func.func @transform_7(%arg0: i32) -> (i32, i32) {
    %c0_i32 = arith.constant 0 : i32
    %c0_i32_0 = arith.constant 0 : i32
    %c0_i32_1 = arith.constant 0 : i32
    return %c0_i32, %c0_i32_0 : i32, i32
  }
  func.func @transform_8(%arg0: i32) -> (i32, i32) {
    %c0_i32 = arith.constant 0 : i32
    %c0_i32_0 = arith.constant 0 : i32
    %c0_i32_1 = arith.constant 0 : i32
    return %c0_i32, %c0_i32_0 : i32, i32
  }
}

</mosaic_0001>

<bundles_post_ra>
// kernel: ragru_forward.1
= control target key start
LH: loop header
LB: loop body
LE: loop exit
PB: predicated region body
PF: predicated region fallthrough
CT: control target
= control target key end

     0   :  { %14 = vsyncpa [#allocation4], 0  ;;  %s2251_s0 = inlined_call_operand.vmem [shape: bf16[16,49], index: 0, kind: input, shape index: {}]   ;;  %s2252_s1 = inlined_call_operand.vmem [shape: bf16[49,384], index: 1, kind: input, shape index: {}]   ;;  %s2253_s2 = inlined_call_operand.hbm [shape: f32[128,384], index: 2, kind: input, shape index: {}]   ;;  %s2254_s3 = inlined_call_operand.vmem [shape: f32[1,384], index: 3, kind: input, shape index: {}]   ;;  %s2255_s4 = inlined_call_operand.vmem [shape: f32[1,128], index: 4, kind: input, shape index: {}]   ;;  %s2256_s5 = inlined_call_operand.vmem [shape: f32[128,4], index: 5, kind: input, shape index: {}]   ;;  %s2257_s6 = inlined_call_operand.vmem [shape: f32[1,4], index: 6, kind: input, shape index: {}]   ;;  %s2258_s7 = inlined_call_operand.vmem [shape: f32[16,128], index: 7, kind: output, shape index: {0}]   ;;  %s2259_s8 = inlined_call_operand.hbm [shape: f32[2,4], index: 8, kind: output, shape index: {1}]  }
   0x1   :  { %15 = vsyncpa [#allocation5], 0  ;;  %s1818_s27 = smov [#allocation3]   ;;  %s1754_s9 = scalar_lea.hbm %s2253_s2, 6144 }
   0x2   :  { %s25_s28 = sshll.u32 %s1818_s27, 4  ;;  %p1755_p0 = scmp.ne.s32.totalorder %s2253_s2, %s1754_s9  ;;  %s26_s28 = int_to_ptr.vmem [resolvable:$true] %s25_s28 }
   0x3   :  { %p1758_p1 = scmp.lt.u32.totalorder %s1754_s9, %s2253_s2 }
   0x5   :  { %p1760_p2 = pnand %p1758_p1, %p1755_p0 }
   0x7   :  { %1763 = shalt.err (!%p1760_p2)
}
   0x8   :  { %s1764_s14 = scalar_lea.vmem %s26_s28, 6144  ;;  %p1769_p4 = scmp.lt.s32.totalorder %s26_s28, %s26_s28 }
   0x9   :  { %p1765_p3 = scmp.ne.s32.totalorder %s26_s28, %s1764_s14  ;;  %p1770_p5 = scmp.lt.s32.totalorder %s1764_s14, %s1764_s14 }
   0xb   :  { %p1771_p6 = por %p1770_p5, %p1769_p4 }
   0xd   :  { %p1772_p7 = pnand %p1771_p6, %p1765_p3 }
   0xf   :  { %1775 = shalt.err (!%p1772_p7)
}
  0x10   :  { %s1819_s15 = smov 384   ;;  %s1820_s16 = smov 24  }
  0x11   :  { %31 = dma.hbm_to_vmem [thread:$0]  %s2253_s2, 6144, %s26_s28, [#allocation4], %s1819_s15, %s1819_s15, %s1820_s16  }
  0x12   :  { %1806 = dma.done.wait [#allocation4], 6144  }
  0x13   :  { %1807 = vsyncadd [#allocation4], 4294961152  ;;  %v1821_v0 = vmov 0.0   ;;  %vm1822_vm0 = vmmov 0   ;;  %v1823_v1 = vmov 0   ;;  %vm142_vm1 = vcmask 1040384  }
  0x14   :  { %1248 = vmatprep.subr.bf16.mxu1 %v1821_v0  ;;  %1256 = vmatprep.mubr.msk.bf16.mxu1 %vm1822_vm0, %v1821_v0  ;;  %v1892_v2 = vld [vmem:[%s2255_s4] ss:$0 sm:$0xff]  ;;  %v1710_v3 = vld [vmem:[%s2252_s1 + $0x4] ss:$12 sps:$4 sm:$0xff]   ;;  %v1712_v4 = vld [vmem:[%s2252_s1 + $0x8] ss:$12 sps:$4 sm:$0xff]   ;;  %v62_v21 = vlaneseq }
  0x15   :  { %186 = vmatprep.mubr.bf16.mxu0 %v1823_v1  ;;  %v1713_v5 = vld [vmem:[%s2252_s1] ss:$12 sps:$4 sm:$0xff]   ;;  %154 = vmatprep.subr.bf16.mxu0 %v1710_v3  ;;  %v1714_v6 = vld [vmem:[%s2252_s1 + $0x1c] ss:$12 sps:$4 sm:$0xff]   ;;  %v1717_v8 = vld [vmem:[%s2252_s1 + $0x18] ss:$12 sps:$4 sm:$0xff]  }
  0x16   :  { %1249 = vmatpush3.bf16.msra.mxu1 %v1712_v4  ;;  %155 = vmatpush1.bf16.msra.mxu0 %v1713_v5  ;;  %v1716_v7 = vld [vmem:[%s2252_s1 + $0x20] ss:$12 sps:$4 sm:$0xff]   ;;  %v144_v10 = vsel %vm142_vm1, 65535, %v1823_v1  ;;  %v1720_v11 = vld [vmem:[%s2252_s1 + $0x38] ss:$12 sps:$4 sm:$0xff]   ;;  %vm138_vm2 = vcmask 400384  }
  0x17   :  { %1250 = vmatprep.subr.bf16.mxu1 %v1821_v0  ;;  %156 = vmatprep.subr.bf16.mxu0 %v1714_v6  ;;  %v1718_v9 = vld [vmem:[%s2252_s1 + $0x34] ss:$12 sps:$4 sm:$0xff]   ;;  %v1721_v12 = vld [vmem:[%s2252_s1 + $0x30] ss:$12 sps:$4 sm:$0xff]   ;;  %v58_v13 = vld [vmem:[%s2252_s1 + $0x48] sm:$0x11] }
  0x18   :  { %v1148_v14 = vcombine.high %v58_v13, %v58_v13  ;;  %v1723_v15 = vld [vmem:[%s2252_s1 + $0x50] ss:$0 sps:$4 sm:$0x11]   ;;  %v1147_v16 = vcombine.low %v58_v13, %v58_v13  ;;  %v1725_v20 = vld [vmem:[%s2251_s0] sm:$0xff]   ;;  %v63_v22 = vshrl.u32 %v62_v21, 7  ;;  %v1936_v44 = vmov 0.0  }
  0x19   :  { %v152_v18 = vand.u32 %v1723_v15, %v144_v10  ;;  %v60_v25 = vld [vmem:[%s2254_s3] sm:$0x7]  ;;  %s1938_s0 = smov 0  }
  0x1a   :  { %1251 = vmatpush3.bf16.msra.mxu1 %v1716_v7  ;;  %157 = vmatpush1.bf16.msra.mxu0 %v1717_v8  ;;  %v149_v17 = vand.u32 %v1148_v14, %v144_v10  ;;  %v146_v19 = vand.u32 %v1147_v16, %v144_v10  ;;  %v72_v23 = vsub.s32 2, %v63_v22  ;;  %v64_v24 = vsub.s32 0, %v63_v22 }
  0x1b   :  { %1252 = vmatprep.subr.bf16.mxu1 %v1821_v0  ;;  %158 = vmatprep.subr.bf16.mxu0 %v1718_v9  ;;  %v68_v26 = vsub.s32 1, %v63_v22 }
  0x1c   :  { %v73_v27 = vrot.slane %v60_v25, %v72_v23  ;;  %v65_v28 = vrot.slane %v60_v25, %v64_v24 }
  0x1d   :  { %v69_v29 = vrot.slane %v60_v25, %v68_v26 }
  0x1e   :  { %1253 = vmatpush3.bf16.msra.mxu1 %v1720_v11  ;;  %159 = vmatpush1.bf16.msra.mxu0 %v1721_v12 }
  0x1f   :  { %1254 = vmatprep.subr.bf16.mxu1 %v1821_v0  ;;  %160 = vmatprep.subr.bf16.mxu0 %v149_v17 }
  0x22   :  { %1255 = vmatpush3.bf16.msra.mxu1 %v152_v18  ;;  %161 = vmatpush1.bf16.msra.mxu0 %v146_v19 }
  0x25   :  { %1257 = vmatmul.mubr.msk.bf16.vlgmr.msra.gmra.mrb[0].mxu1 %vm138_vm2, %v1725_v20  ;;  %1150 = vmatmul.mubr.msk.bf16.vlgmr.msra.gmra.mrb[0].mxu0 %vm138_vm2, %v1725_v20 }
  0xf8   :  { %v231_v30 = vpop.f32.mrb[0].mxu1  ;;  %v188_v31 = vpop.f32.mrb[0].mxu0 }
  0xf9   :  { %v232_v32 = vadd.f32 %v231_v30, %v73_v27  ;;  %v189_v33 = vadd.f32 %v188_v31, %v65_v28  ;;  %v1258_v34 = vpop.f32.mrb[1].mxu1  ;;  %v190_v35 = vpop.f32.mrb[1].mxu0 }
  0xfa   :  { %v191_v36 = vadd.f32 %v190_v35, %v69_v29  ;;  %v234_v37 = vpop.f32.mrb[2].mxu1  ;;  %v192_v38 = vpop.f32.mrb[2].mxu0 }
  0xfb   :  { %240 = vst [vmem:[#allocation2 + $0x10] sm:$0xff] %v232_v32  ;;  %238 = vst [vmem:[#allocation2] sm:$0xff] %v189_v33  ;;  %v235_v39 = vadd.f32 %v234_v37, %v73_v27  ;;  %v193_v40 = vadd.f32 %v192_v38, %v65_v28  ;;  %v1259_v41 = vpop.f32.mrb[3].mxu1  ;;  %v194_v42 = vpop.f32.mrb[3].mxu0 }
  0xfc   :  { %239 = vst [vmem:[#allocation2 + $0x8] sm:$0xff] %v191_v36  ;;  %v195_v43 = vadd.f32 %v194_v42, %v69_v29 }
  0xfd   :  { %243 = vst [vmem:[#allocation2 + $0x28] sm:$0xff] %v235_v39  ;;  %241 = vst [vmem:[#allocation2 + $0x18] sm:$0xff] %v193_v40 }
  0xfe   :  { %242 = vst [vmem:[#allocation2 + $0x20] sm:$0xff] %v195_v43 }
  0xff LB: > { %v262_v45 = vld [vmem:[#allocation3 + $0x8] sm:$0xff]  ;;  %v265_v46 = vld [vmem:[#allocation3 + $0x20] sm:$0xff]  ;;  %v264_v49 = vld [vmem:[#allocation3 + $0x18] sm:$0xff]  ;;  %v1824_v52 = vmov 0.0|0.0   ;;  %v1825_v53 = vmov 0.0   ;;  %vm1826_vm3 = vmmov 0   ;;  %s1816_s0 = sphi %s1938_s0, %s250_s0   ;;  %v1812_v44 = vphi %v1936_v44, %v2260_v44  }
 0x100   : > { %v261_v47 = vld [vmem:[#allocation3] sm:$0xff]  ;;  %v1946_v48 = vpack.c.bf16 %v265_v46, %v262_v45  ;;  %v268_v50 = vld [vmem:[#allocation3 + $0x38] sm:$0xff]  ;;  %v271_v51 = vld [vmem:[#allocation3 + $0x50] sm:$0xff]  ;;  %1467 = vmatprep.subr.bf16.mxu1 %v1824_v52  ;;  %376 = vmatprep.mubr.f32.mxu0 %v1825_v53  ;;  %s1152_s3 = sshll.u32 %s1816_s0, 3  ;;  %vm994_vm4 = vcmask 1041408   ;;  %vm996_vm5 = vcmask 1043456  }
 0x101   : > { %v1950_v54 = vpack.c.bf16 %v264_v49, %v261_v47  ;;  %v1952_v55 = vpack.c.bf16 %v271_v51, %v268_v50  ;;  %v267_v56 = vld [vmem:[#allocation3 + $0x30] sm:$0xff]  ;;  %v270_v57 = vld [vmem:[#allocation3 + $0x48] sm:$0xff]  ;;  %1292 = vmatprep.mubr.msk.f32.mxu1 %vm1826_vm3, %v1825_v53  ;;  %v277_v59 = vld [vmem:[#allocation3 + $0x80] sm:$0xff]  ;;  %s253_s22 = sshra.s32 %s1152_s3, 3  ;;  %vm998_vm6 = vcmask 1045504   ;;  %s1000_s26 = scalar_lea.vmem %s2258_s7, %s1152_s3 }
 0x102   : > { %v274_v58 = vld [vmem:[#allocation3 + $0x68] sm:$0xff]  ;;  %1436 = vmatprep.subr.bf16.mxu0 %v1946_v48  ;;  %v1958_v60 = vpack.c.bf16 %v270_v57, %v267_v56  ;;  %v273_v62 = vld [vmem:[#allocation3 + $0x60] sm:$0xff]  ;;  %v276_v63 = vld [vmem:[#allocation3 + $0x78] sm:$0xff]  ;;  %s1157_s2 = smul.u32 24, %s253_s22  ;;  %s250_s0 = sadd.s32 1, %s1816_s0  }
 0x103   : > { %1438 = vmatpush1.bf16.msra.mxu0 %v1950_v54  ;;  %v1961_v61 = vpack.c.bf16 %v277_v59, %v274_v58  ;;  %v280_v1 = vld [vmem:[#allocation3 + $0x98] sm:$0xff]  ;;  %v283_v3 = vld [vmem:[#allocation3 + $0xb0] sm:$0xff]  ;;  %v266_v5 = vld [vmem:[#allocation3 + $0x28] sm:$0xff]  ;;  %v1964_v6 = vpack.c.bf16 %v276_v63, %v273_v62  ;;  %v2023_v62 = vrot.slane %v1812_v44, 6  ;;  %p247_p8 = scmp.ge.s32.totalorder %s250_s0, 2  }
 0x104   : > { %1440 = vmatprep.subr.bf16.mxu0 %v1952_v55  ;;  %v263_v4 = vld [vmem:[#allocation3 + $0x10] sm:$0xff]  ;;  %v269_v8 = vld [vmem:[#allocation3 + $0x40] sm:$0xff]  ;;  %v1969_v9 = vpack.c.bf16 %v283_v3, %v280_v1  ;;  %v282_v11 = vld [vmem:[#allocation3 + $0xa8] sm:$0xff]  ;;  %s257_s23 = scalar_lea.vmem [#allocation2], %s1157_s2  ;;  %s1828_s10 = smov (%p247_p8), [#allocation6]   ;;  %vm1104_vm7 = vcmask (%p247_p8), 25600  }
 0x105   : > { %v1966_v7 = vpack.c.bf16 %v266_v5, %v263_v4  ;;  %v279_v10 = vld [vmem:[#allocation3 + $0x90] sm:$0xff]  ;;  %v272_v12 = vld [vmem:[#allocation3 + $0x58] sm:$0xff]  ;;  %v286_v13 = vld [vmem:[#allocation3 + $0xc8] sm:$0xff] }
 0x106   : > { %v289_v14 = vld [vmem:[#allocation3 + $0xe0] sm:$0xff]  ;;  %v1972_v15 = vpack.c.bf16 %v272_v12, %v269_v8  ;;  %v275_v16 = vld [vmem:[#allocation3 + $0x70] sm:$0xff]  ;;  %v278_v17 = vld [vmem:[#allocation3 + $0x88] sm:$0xff]  ;;  %v1976_v18 = vpack.c.bf16 %v282_v11, %v279_v10 }
 0x107   : > { %1442 = vmatpush1.bf16.msra.mxu0 %v1958_v60  ;;  %1469 = vmatpush3.bf16.msra.mxu1 %v1966_v7  ;;  %v1979_v19 = vpack.c.bf16 %v289_v14, %v286_v13  ;;  %v285_v20 = vld [vmem:[#allocation3 + $0xc0] sm:$0xff]  ;;  %v288_v21 = vld [vmem:[#allocation3 + $0xd8] sm:$0xff]  ;;  %v295_v23 = vld [vmem:[#allocation3 + $0x110] sm:$0xff]  ;;  %v1982_v24 = vpack.c.bf16 %v278_v17, %v275_v16 }
 0x108   : > { %1444 = vmatprep.subr.bf16.mxu0 %v1961_v61  ;;  %1470 = vmatprep.subr.bf16.mxu1 %v1824_v52  ;;  %v292_v22 = vld [vmem:[#allocation3 + $0xf8] sm:$0xff]  ;;  %v281_v25 = vld [vmem:[#allocation3 + $0xa0] sm:$0xff]  ;;  %v1986_v27 = vpack.c.bf16 %v288_v21, %v285_v20  ;;  %v291_v29 = vld [vmem:[#allocation3 + $0xf0] sm:$0xff] }
 0x109   : > { %v284_v26 = vld [vmem:[#allocation3 + $0xb8] sm:$0xff]  ;;  %v1989_v28 = vpack.c.bf16 %v295_v23, %v292_v22  ;;  %v294_v30 = vld [vmem:[#allocation3 + $0x108] sm:$0xff]  ;;  %v301_v32 = vld [vmem:[#allocation3 + $0x140] sm:$0xff] }
 0x10a   : > { %v298_v31 = vld [vmem:[#allocation3 + $0x128] sm:$0xff]  ;;  %v1992_v33 = vpack.c.bf16 %v284_v26, %v281_v25  ;;  %v287_v34 = vld [vmem:[#allocation3 + $0xd0] sm:$0xff]  ;;  %v1996_v36 = vpack.c.bf16 %v294_v30, %v291_v29  ;;  %v297_v38 = vld [vmem:[#allocation3 + $0x120] sm:$0xff] }
 0x10b   : > { %1446 = vmatpush1.bf16.msra.mxu0 %v1964_v6  ;;  %1472 = vmatpush3.bf16.msra.mxu1 %v1972_v15  ;;  %v290_v35 = vld [vmem:[#allocation3 + $0xe8] sm:$0xff]  ;;  %v1999_v37 = vpack.c.bf16 %v301_v32, %v298_v31  ;;  %v300_v39 = vld [vmem:[#allocation3 + $0x138] sm:$0xff]  ;;  %v307_v41 = vld [vmem:[#allocation3 + $0x170] sm:$0xff] }
 0x10c   : > { %1448 = vmatprep.subr.bf16.mxu0 %v1969_v9  ;;  %1473 = vmatprep.subr.bf16.mxu1 %v1824_v52  ;;  %v304_v40 = vld [vmem:[#allocation3 + $0x158] sm:$0xff]  ;;  %v2002_v42 = vpack.c.bf16 %v290_v35, %v287_v34  ;;  %v293_v43 = vld [vmem:[#allocation3 + $0x100] sm:$0xff]  ;;  %v2006_v46 = vpack.c.bf16 %v300_v39, %v297_v38  ;;  %v303_v49 = vld [vmem:[#allocation3 + $0x150] sm:$0xff] }
 0x10d   : > { %v296_v45 = vld [vmem:[#allocation3 + $0x118] sm:$0xff]  ;;  %v2009_v47 = vpack.c.bf16 %v307_v41, %v304_v40  ;;  %v306_v50 = vld [vmem:[#allocation3 + $0x168] sm:$0xff]  ;;  %v299_v56 = vld [vmem:[#allocation3 + $0x130] sm:$0xff] }
 0x10e   : > { %v2012_v51 = vpack.c.bf16 %v296_v45, %v293_v43  ;;  %v302_v57 = vld [vmem:[#allocation3 + $0x148] sm:$0xff]  ;;  %v2016_v58 = vpack.c.bf16 %v306_v50, %v303_v49  ;;  %v305_v63 = vld [vmem:[#allocation3 + $0x160] sm:$0xff]  ;;  %v308_v1 = vld [vmem:[#allocation3 + $0x178] sm:$0xff] }
 0x10f   : > { %1450 = vmatpush1.bf16.msra.mxu0 %v1976_v18  ;;  %1475 = vmatpush3.bf16.msra.mxu1 %v1982_v24  ;;  %v2020_v59 = vpack.c.bf16 %v302_v57, %v299_v56  ;;  %v2029_v3 = vpack.c.bf16 %v308_v1, %v305_v63  ;;  %v2074_v44 = vld [vmem:[%s257_s23] sm:$0xff]  ;;  %v2077_v8 = vld [vmem:[%s257_s23 + $0x8] sm:$0xff]  ;;  %v2081_v23 = vld [vmem:[%s257_s23 + $0x10] sm:$0xff] }
 0x110   : > { %1452 = vmatprep.subr.bf16.mxu0 %v1979_v19  ;;  %1476 = vmatprep.subr.bf16.mxu1 %v1824_v52 }
 0x113   : > { %1454 = vmatpush1.bf16.msra.mxu0 %v1986_v27  ;;  %1478 = vmatpush3.bf16.msra.mxu1 %v1992_v33 }
 0x114   : > { %1456 = vmatprep.subr.bf16.mxu0 %v1989_v28  ;;  %1479 = vmatprep.subr.bf16.mxu1 %v1824_v52 }
 0x117   : > { %1458 = vmatpush1.bf16.msra.mxu0 %v1996_v36  ;;  %1481 = vmatpush3.bf16.msra.mxu1 %v2002_v42 }
 0x118   : > { %1460 = vmatprep.subr.bf16.mxu0 %v1999_v37  ;;  %1482 = vmatprep.subr.bf16.mxu1 %v1824_v52 }
 0x11b   : > { %1462 = vmatpush1.bf16.msra.mxu0 %v2006_v46  ;;  %1484 = vmatpush3.bf16.msra.mxu1 %v2012_v51 }
 0x11c   : > { %1464 = vmatprep.subr.bf16.mxu0 %v2009_v47  ;;  %1485 = vmatprep.subr.bf16.mxu1 %v1824_v52 }
 0x11f   : > { %1466 = vmatpush1.bf16.msra.mxu0 %v2016_v58  ;;  %1487 = vmatpush3.bf16.msra.mxu1 %v2020_v59 }
 0x120   : > { %1492 = vmatprep.subr.bf16.mxu0 %v1946_v48  ;;  %1488 = vmatprep.subr.bf16.mxu1 %v1824_v52 }
 0x122   : > { %377 = vmatmul.mubr.f32.vlgmr.msra.gmra.mrb[0].mxu0 %v2023_v62 }
 0x123   : > { %1494 = vmatpush1.bf16.msra.mxu0 %v1950_v54  ;;  %541 = vmatprep.mubr.f32.mxu0 %v1825_v53 }
 0x124   : > { %1496 = vmatprep.subr.bf16.mxu0 %v1952_v55  ;;  %1490 = vmatpush3.bf16.msra.mxu1 %v2029_v3 }
 0x125   : > { %1523 = vmatprep.subr.bf16.mxu1 %v1824_v52 }
 0x127   : > { %1498 = vmatpush1.bf16.msra.mxu0 %v1958_v60  ;;  %1293 = vmatmul.mubr.f32.vlgmr.msra.gmra.mrb[0].mxu1 %v2023_v62 }
 0x128   : > { %1500 = vmatprep.subr.bf16.mxu0 %v1961_v61  ;;  %1525 = vmatpush3.bf16.msra.mxu1 %v1966_v7 }
 0x129   : > { %1327 = vmatprep.mubr.msk.f32.mxu1 %vm1826_vm3, %v1825_v53  ;;  %1526 = vmatprep.subr.bf16.mxu1 %v1824_v52 }
 0x12b   : > { %1502 = vmatpush1.bf16.msra.mxu0 %v1964_v6 }
 0x12c   : > { %1504 = vmatprep.subr.bf16.mxu0 %v1969_v9  ;;  %1528 = vmatpush3.bf16.msra.mxu1 %v1972_v15 }
 0x12d   : > { %1529 = vmatprep.subr.bf16.mxu1 %v1824_v52 }
 0x12f   : > { %1506 = vmatpush1.bf16.msra.mxu0 %v1976_v18 }
 0x130   : > { %1508 = vmatprep.subr.bf16.mxu0 %v1979_v19  ;;  %1531 = vmatpush3.bf16.msra.mxu1 %v1982_v24 }
 0x131   : > { %1532 = vmatprep.subr.bf16.mxu1 %v1824_v52 }
 0x133   : > { %1510 = vmatpush1.bf16.msra.mxu0 %v1986_v27 }
 0x134   : > { %1512 = vmatprep.subr.bf16.mxu0 %v1989_v28  ;;  %1534 = vmatpush3.bf16.msra.mxu1 %v1992_v33 }
 0x135   : > { %1535 = vmatprep.subr.bf16.mxu1 %v1824_v52 }
 0x137   : > { %1514 = vmatpush1.bf16.msra.mxu0 %v1996_v36 }
 0x138   : > { %1516 = vmatprep.subr.bf16.mxu0 %v1999_v37  ;;  %1537 = vmatpush3.bf16.msra.mxu1 %v2002_v42 }
 0x139   : > { %1538 = vmatprep.subr.bf16.mxu1 %v1824_v52 }
 0x13b   : > { %1518 = vmatpush1.bf16.msra.mxu0 %v2006_v46 }
 0x13c   : > { %1520 = vmatprep.subr.bf16.mxu0 %v2009_v47  ;;  %1540 = vmatpush3.bf16.msra.mxu1 %v2012_v51 }
 0x13d   : > { %1541 = vmatprep.subr.bf16.mxu1 %v1824_v52 }
 0x13f   : > { %1522 = vmatpush1.bf16.msra.mxu0 %v2016_v58 }
 0x140   : > { %1548 = vmatprep.subr.bf16.mxu0 %v1946_v48  ;;  %1543 = vmatpush3.bf16.msra.mxu1 %v2020_v59 }
 0x141   : > { %1544 = vmatprep.subr.bf16.mxu1 %v1824_v52 }
 0x144   : > { %1546 = vmatpush3.bf16.msra.mxu1 %v2029_v3 }
 0x145   : > { %1579 = vmatprep.subr.bf16.mxu1 %v1824_v52 }
 0x1f5   : > { %v378_v4 = vpop.f32.mrb[0].mxu0 }
 0x1f6   : > { %v453_v5 = vadd.f32 %v378_v4, %v2074_v44  ;;  %v380_v10 = vpop.f32.mrb[1].mxu0 }
 0x1f7   : > { %v458_v12 = vadd.f32 %v380_v10, %v2077_v8 }
 0x1f8   : > { %v454_v11 = vmul.f32 0.5, %v453_v5 }
 0x1f9   : > { %v459_v16 = vmul.f32 0.5, %v458_v12 }
 0x1fa   : > { %1726 = vtanh.f32 %v454_v11  ;;  %v449_v13 = vpop.f32.mrb[0].mxu1 }
 0x1fb   : > { %v1294_v14 = vpop.f32.mrb[1].mxu1  ;;  %1728 = vtanh.f32 %v459_v16  ;;  %v469_v21 = vadd.f32 %v1892_v2, %v449_v13 }
 0x204   : > { %v1727_v17 = vpop.eup %1726 }
 0x205   : > { %v456_v20 = vmul.f32 0.5, %v1727_v17  ;;  %v1729_v26 = vpop.eup %1728 }
 0x206   : > { %v461_v30 = vmul.f32 0.5, %v1729_v26 }
 0x207   : > { %v457_v22 = vadd.f32 0.5, %v456_v20 }
 0x208   : > { %v462_v31 = vadd.f32 0.5, %v461_v30 }
 0x209   : > { %v470_v25 = vmul.f32 %v469_v21, %v457_v22 }
 0x20a   : > { %v473_v32 = vsub.f32 1.0, %v462_v31  ;;  %v475_v35 = vmul.f32 %v462_v31, %v2023_v62 }
 0x20b   : > { %v471_v29 = vadd.f32 %v470_v25, %v2081_v23 }
 0x20d   : > { %1730 = vtanh.f32 %v471_v29 }
 0x217   : > { %v1731_v34 = vpop.eup %1730 }
 0x218   : > { %v474_v38 = vmul.f32 %v1731_v34, %v473_v32 }
 0x21a   : > { %v2085_v39 = vadd.f32 %v475_v35, %v474_v38 }
 0x21c   : > { %542 = vmatmul.mubr.f32.vlgmr.msra.gmra.mrb[2].mxu0 %v2085_v39  ;;  %1328 = vmatmul.mubr.f32.vlgmr.msra.gmra.mrb[2].mxu1 %v2085_v39  ;;  %v644_v20 = vrot.slane %v2085_v39, 6 }
 0x21d   : > { %1550 = vmatpush1.bf16.msra.mxu0 %v1950_v54  ;;  %1581 = vmatpush3.bf16.msra.mxu1 %v1966_v7 }
 0x21e   : > { %1552 = vmatprep.subr.bf16.mxu0 %v1952_v55  ;;  %1582 = vmatprep.subr.bf16.mxu1 %v1824_v52 }
 0x21f   : > { %715 = vmatprep.mubr.f32.mxu0 %v1825_v53  ;;  %1362 = vmatprep.mubr.msk.f32.mxu1 %vm1826_vm3, %v1825_v53 }
 0x221   : > { %1554 = vmatpush1.bf16.msra.mxu0 %v1958_v60  ;;  %1584 = vmatpush3.bf16.msra.mxu1 %v1972_v15 }
 0x222   : > { %1556 = vmatprep.subr.bf16.mxu0 %v1961_v61  ;;  %1585 = vmatprep.subr.bf16.mxu1 %v1824_v52 }
 0x225   : > { %1558 = vmatpush1.bf16.msra.mxu0 %v1964_v6  ;;  %1587 = vmatpush3.bf16.msra.mxu1 %v1982_v24 }
 0x226   : > { %1560 = vmatprep.subr.bf16.mxu0 %v1969_v9  ;;  %1588 = vmatprep.subr.bf16.mxu1 %v1824_v52 }
 0x229   : > { %1562 = vmatpush1.bf16.msra.mxu0 %v1976_v18  ;;  %1590 = vmatpush3.bf16.msra.mxu1 %v1992_v33 }
 0x22a   : > { %1564 = vmatprep.subr.bf16.mxu0 %v1979_v19  ;;  %1591 = vmatprep.subr.bf16.mxu1 %v1824_v52 }
 0x22d   : > { %1566 = vmatpush1.bf16.msra.mxu0 %v1986_v27  ;;  %1593 = vmatpush3.bf16.msra.mxu1 %v2002_v42 }
 0x22e   : > { %1568 = vmatprep.subr.bf16.mxu0 %v1989_v28  ;;  %1594 = vmatprep.subr.bf16.mxu1 %v1824_v52 }
 0x231   : > { %1570 = vmatpush1.bf16.msra.mxu0 %v1996_v36  ;;  %1596 = vmatpush3.bf16.msra.mxu1 %v2012_v51 }
 0x232   : > { %1572 = vmatprep.subr.bf16.mxu0 %v1999_v37  ;;  %1597 = vmatprep.subr.bf16.mxu1 %v1824_v52 }
 0x235   : > { %1574 = vmatpush1.bf16.msra.mxu0 %v2006_v46  ;;  %1599 = vmatpush3.bf16.msra.mxu1 %v2020_v59 }
 0x236   : > { %1576 = vmatprep.subr.bf16.mxu0 %v2009_v47  ;;  %1600 = vmatprep.subr.bf16.mxu1 %v1824_v52 }
 0x239   : > { %1578 = vmatpush1.bf16.msra.mxu0 %v2016_v58  ;;  %1602 = vmatpush3.bf16.msra.mxu1 %v2029_v3 }
 0x23a   : > { %1604 = vmatprep.subr.bf16.mxu0 %v1946_v48  ;;  %1635 = vmatprep.subr.bf16.mxu1 %v1824_v52 }
 0x2ef   : > { %v543_v40 = vpop.f32.mrb[2].mxu0  ;;  %v614_v41 = vpop.f32.mrb[2].mxu1 }
 0x2f0   : > { %v619_v43 = vrot.slane %v543_v40, 6  ;;  %v545_v45 = vpop.f32.mrb[3].mxu0  ;;  %v1329_v49 = vpop.f32.mrb[3].mxu1  ;;  %v634_v1 = vadd.f32 %v1892_v2, %v614_v41 }
 0x2f1   : > { %v627_v50 = vrot.slane %v545_v45, 6 }
 0x2f2   : > { %v621_v56 = vadd.f32 %v619_v43, %v2074_v44  ;;  %v636_v10 = vrot.slane %v634_v1, 6 }
 0x2f3   : > { %v629_v62 = vadd.f32 %v627_v50, %v2077_v8 }
 0x2f4   : > { %v622_v57 = vmul.f32 0.5, %v621_v56 }
 0x2f5   : > { %v630_v63 = vmul.f32 0.5, %v629_v62 }
 0x2f6   : > { %1732 = vtanh.f32 %v622_v57 }
 0x2f7   : > { %1734 = vtanh.f32 %v630_v63 }
 0x300   : > { %v1733_v4 = vpop.eup %1732 }
 0x301   : > { %v624_v48 = vmul.f32 0.5, %v1733_v4  ;;  %v1735_v12 = vpop.eup %1734 }
 0x302   : > { %v632_v14 = vmul.f32 0.5, %v1735_v12 }
 0x303   : > { %v625_v5 = vadd.f32 0.5, %v624_v48 }
 0x304   : > { %v633_v16 = vadd.f32 0.5, %v632_v14 }
 0x305   : > { %v638_v11 = vmul.f32 %v636_v10, %v625_v5 }
 0x306   : > { %v641_v17 = vsub.f32 1.0, %v633_v16  ;;  %v646_v25 = vmul.f32 %v644_v20, %v633_v16 }
 0x307   : > { %v639_v13 = vadd.f32 %v638_v11, %v2081_v23 }
 0x309   : > { %1736 = vtanh.f32 %v639_v13 }
 0x313   : > { %v1737_v21 = vpop.eup %1736 }
 0x314   : > { %v642_v22 = vmul.f32 %v1737_v21, %v641_v17  ;;  %v1003_v21 = vld [vmem:[%s2256_s5 + $0x8] sm:$0xff] (%p247_p8) }
 0x316   : > { %v2129_v26 = vadd.f32 %v646_v25, %v642_v22  ;;  %v1004_v22 = vld [vmem:[%s2256_s5 + $0x10] sm:$0xff] (%p247_p8)  ;;  %v1827_v25 = vmov (%p247_p8), 0.0|0.0  }
 0x318   : > { %v649_v29 = vrot.slane %v2129_v26, 2  ;;  %v995_v31 = vsel %vm994_vm4, %v2085_v39, %v2129_v26 }
 0x31a   : > { %716 = vmatmul.mubr.f32.vlgmr.msra.gmra.mrb[4].mxu0 %v649_v29  ;;  %1363 = vmatmul.mubr.f32.vlgmr.msra.gmra.mrb[4].mxu1 %v649_v29 }
 0x31b   : > { %1606 = vmatpush1.bf16.msra.mxu0 %v1950_v54  ;;  %1637 = vmatpush3.bf16.msra.mxu1 %v1966_v7 }
 0x31c   : > { %1608 = vmatprep.subr.bf16.mxu0 %v1952_v55  ;;  %1638 = vmatprep.subr.bf16.mxu1 %v1824_v52 }
 0x31d   : > { %888 = vmatprep.mubr.f32.mxu0 %v1825_v53  ;;  %1397 = vmatprep.mubr.msk.f32.mxu1 %vm1826_vm3, %v1825_v53 }
 0x31f   : > { %1610 = vmatpush1.bf16.msra.mxu0 %v1958_v60  ;;  %1640 = vmatpush3.bf16.msra.mxu1 %v1972_v15 }
 0x320   : > { %1612 = vmatprep.subr.bf16.mxu0 %v1961_v61  ;;  %1641 = vmatprep.subr.bf16.mxu1 %v1824_v52 }
 0x323   : > { %1614 = vmatpush1.bf16.msra.mxu0 %v1964_v6  ;;  %1643 = vmatpush3.bf16.msra.mxu1 %v1982_v24 }
 0x324   : > { %1616 = vmatprep.subr.bf16.mxu0 %v1969_v9  ;;  %1644 = vmatprep.subr.bf16.mxu1 %v1824_v52 }
 0x327   : > { %1618 = vmatpush1.bf16.msra.mxu0 %v1976_v18  ;;  %1646 = vmatpush3.bf16.msra.mxu1 %v1992_v33 }
 0x328   : > { %1620 = vmatprep.subr.bf16.mxu0 %v1979_v19  ;;  %1647 = vmatprep.subr.bf16.mxu1 %v1824_v52 }
 0x32b   : > { %1622 = vmatpush1.bf16.msra.mxu0 %v1986_v27  ;;  %1649 = vmatpush3.bf16.msra.mxu1 %v2002_v42  ;;  %v817_v42 = vrot.slane %v2129_v26, 6 }
 0x32c   : > { %1624 = vmatprep.subr.bf16.mxu0 %v1989_v28  ;;  %1650 = vmatprep.subr.bf16.mxu1 %v1824_v52 }
 0x32f   : > { %1626 = vmatpush1.bf16.msra.mxu0 %v1996_v36  ;;  %1652 = vmatpush3.bf16.msra.mxu1 %v2012_v51 }
 0x330   : > { %1628 = vmatprep.subr.bf16.mxu0 %v1999_v37  ;;  %1653 = vmatprep.subr.bf16.mxu1 %v1824_v52 }
 0x333   : > { %1630 = vmatpush1.bf16.msra.mxu0 %v2006_v46  ;;  %1655 = vmatpush3.bf16.msra.mxu1 %v2020_v59 }
 0x334   : > { %1632 = vmatprep.subr.bf16.mxu0 %v2009_v47  ;;  %1656 = vmatprep.subr.bf16.mxu1 %v1824_v52 }
 0x337   : > { %1634 = vmatpush1.bf16.msra.mxu0 %v2016_v58  ;;  %1658 = vmatpush3.bf16.msra.mxu1 %v2029_v3 }
 0x338   :  { %1659 = vmatprep.subr.bf16.mxu0 (%p247_p8), %v1827_v25 }
 0x3ed   : > { %v717_v53 = vpop.f32.mrb[4].mxu0  ;;  %v788_v54 = vpop.f32.mrb[4].mxu1 }
 0x3ee   : > { %v793_v55 = vrot.slane %v717_v53, 4  ;;  %v719_v60 = vpop.f32.mrb[5].mxu0  ;;  %v1364_v61 = vpop.f32.mrb[5].mxu1  ;;  %v808_v52 = vadd.f32 %v1892_v2, %v788_v54  ;;  %v1006_v53 = vld [vmem:[%s2256_s5 + $0x20] sm:$0xff] (%p247_p8)  ;;  %v1007_v54 = vld [vmem:[%s2256_s5 + $0x28] sm:$0xff] (%p247_p8) }
 0x3ef   : > { %v801_v6 = vrot.slane %v719_v60, 4  ;;  %v1009_v60 = vld [vmem:[%s2256_s5 + $0x38] sm:$0xff] (%p247_p8) }
 0x3f0   : > { %v795_v7 = vadd.f32 %v793_v55, %v2074_v44  ;;  %v810_v36 = vrot.slane %v808_v52, 4  ;;  %v1008_v55 = vld [vmem:[%s2256_s5 + $0x30] sm:$0xff] (%p247_p8) }
 0x3f1   : > { %v803_v9 = vadd.f32 %v801_v6, %v2077_v8  ;;  %v1669_v61 = vpack.c.bf16 (%p247_p8), %v1009_v60, %v1008_v55  ;;  %v1010_v6 = vld [vmem:[%s2256_s5 + $0x40] sm:$0xff] (%p247_p8) }
 0x3f2   : > { %v796_v15 = vmul.f32 0.5, %v795_v7  ;;  %v1011_v7 = vld [vmem:[%s2256_s5 + $0x48] sm:$0xff] (%p247_p8) }
 0x3f3   : > { %v804_v18 = vmul.f32 0.5, %v803_v9  ;;  %v1672_v9 = vpack.c.bf16 (%p247_p8), %v1011_v7, %v1010_v6 }
 0x3f4   : > { %1738 = vtanh.f32 %v796_v15  ;;  %v1012_v15 = vld [vmem:[%s2256_s5 + $0x50] sm:$0xff] (%p247_p8) }
 0x3f5   : > { %1740 = vtanh.f32 %v804_v18  ;;  %v1013_v18 = vld [vmem:[%s2256_s5 + $0x58] sm:$0xff] (%p247_p8) }
 0x3f6   :  { %v1675_v52 = vpack.c.bf16 (%p247_p8), %v1013_v18, %v1012_v15 }
 0x3fe   : > { %v1739_v19 = vpop.eup %1738 }
 0x3ff   : > { %v1741_v24 = vpop.eup %1740  ;;  %v798_v27 = vmul.f32 0.5, %v1739_v19  ;;  %v1014_v19 = vld [vmem:[%s2256_s5 + $0x60] sm:$0xff] (%p247_p8) }
 0x400   : > { %v806_v28 = vmul.f32 0.5, %v1741_v24  ;;  %v1015_v24 = vld [vmem:[%s2256_s5 + $0x68] sm:$0xff] (%p247_p8) }
 0x401   : > { %v799_v33 = vadd.f32 0.5, %v798_v27  ;;  %v1678_v27 = vpack.c.bf16 (%p247_p8), %v1015_v24, %v1014_v19 }
 0x402   : > { %v807_v37 = vadd.f32 0.5, %v806_v28  ;;  %v1016_v28 = vld [vmem:[%s2256_s5 + $0x70] sm:$0xff] (%p247_p8) }
 0x403   : > { %v812_v46 = vmul.f32 %v810_v36, %v799_v33  ;;  %v1017_v33 = vld [vmem:[%s2256_s5 + $0x78] sm:$0xff] (%p247_p8) }
 0x404   : > { %v819_v47 = vmul.f32 %v817_v42, %v807_v37  ;;  %v815_v58 = vsub.f32 1.0, %v807_v37  ;;  %v1681_v36 = vpack.c.bf16 (%p247_p8), %v1017_v33, %v1016_v28  ;;  %v1155_v42 = vld [vmem:[%s2257_s6] ss:$0 sm:$0xff] (%p247_p8) }
 0x405   : > { %v813_v51 = vadd.f32 %v812_v46, %v2081_v23 }
 0x407   : > { %1742 = vtanh.f32 %v813_v51 }
 0x411   : > { %v1743_v59 = vpop.eup %1742 }
 0x412   : > { %v816_v3 = vmul.f32 %v1743_v59, %v815_v58 }
 0x414   : > { %v820_v30 = vadd.f32 %v819_v47, %v816_v3 }
 0x416   : > { %v997_v32 = vsel %vm996_vm5, %v995_v31, %v820_v30  ;;  %v822_v34 = vrot.slane %v820_v30, 4  ;;  %v990_v11 = vrot.slane %v820_v30, 6 }
 0x418   : > { %889 = vmatmul.mubr.f32.vlgmr.msra.gmra.mrb[6].mxu0 %v822_v34  ;;  %1398 = vmatmul.mubr.f32.vlgmr.msra.gmra.mrb[6].mxu1 %v822_v34 }
 0x419   :  { %1432 = vmatprep.mubr.msk.f32.mxu0 (%p247_p8), %vm1822_vm0, %v1821_v0  ;;  %v1666_v0 = vpack.c.bf16 (%p247_p8), %v1007_v54, %v1006_v53 }
 0x4eb   : > { %v890_v35 = vpop.f32.mrb[6].mxu0  ;;  %v961_v38 = vpop.f32.mrb[6].mxu1 }
 0x4ec   : > { %v966_v40 = vrot.slane %v890_v35, 2  ;;  %v892_v41 = vpop.f32.mrb[7].mxu0  ;;  %v1399_v43 = vpop.f32.mrb[7].mxu1  ;;  %v981_v39 = vadd.f32 %v1892_v2, %v961_v38  ;;  %v1005_v2 = vld [vmem:[%s2256_s5 + $0x18] sm:$0xff] (%p247_p8) }
 0x4ed   : > { %v974_v45 = vrot.slane %v892_v41, 2  ;;  %v1663_v29 = vpack.c.bf16 (%p247_p8), %v1005_v2, %v1004_v22 }
 0x4ee   : > { %v968_v49 = vadd.f32 %v966_v40, %v2074_v44  ;;  %v983_v5 = vrot.slane %v981_v39, 2 }
 0x4ef   : > { %v976_v50 = vadd.f32 %v974_v45, %v2077_v8 }
 0x4f0   : > { %v969_v56 = vmul.f32 0.5, %v968_v49 }
 0x4f1   : > { %v977_v57 = vmul.f32 0.5, %v976_v50 }
 0x4f2   : > { %1744 = vtanh.f32 %v969_v56 }
 0x4f3   : > { %1746 = vtanh.f32 %v977_v57 }
 0x4fc   : > { %v1745_v62 = vpop.eup %1744 }
 0x4fd   : > { %v1747_v63 = vpop.eup %1746  ;;  %v971_v1 = vmul.f32 0.5, %v1745_v62 }
 0x4fe   : > { %v979_v4 = vmul.f32 0.5, %v1747_v63 }
 0x4ff   : > { %v972_v48 = vadd.f32 0.5, %v971_v1 }
 0x500   : > { %v980_v10 = vadd.f32 0.5, %v979_v4 }
 0x501   : > { %v985_v12 = vmul.f32 %v983_v5, %v972_v48 }
 0x502   : > { %v992_v13 = vmul.f32 %v990_v11, %v980_v10  ;;  %v988_v8 = vsub.f32 1.0, %v980_v10 }
 0x503   : > { %v986_v44 = vadd.f32 %v985_v12, %v2081_v23  ;;  %v1002_v23 = vld [vmem:[%s2256_s5] sm:$0xff] (%p247_p8)  ;;  %s1114_s5 = sshll.u32 (%p247_p8), %s1828_s10, 4  ;;  %s1115_s5 = int_to_ptr.vmem [resolvable:$true] %s1114_s5 }
 0x504   :  { %v1660_v26 = vpack.c.bf16 (%p247_p8), %v1003_v21, %v1002_v23  ;;  %s1776_s11 = scalar_lea.vmem (%p247_p8), %s1115_s5, 32  ;;  %p1781_p10 = scmp.lt.s32.totalorder (%p247_p8), %s1115_s5, %s1115_s5 }
 0x505   : > { %1748 = vtanh.f32 %v986_v44  ;;  %p1777_p9 = scmp.ne.s32.totalorder (%p247_p8), %s1115_s5, %s1776_s11  ;;  %p1782_p11 = scmp.lt.s32.totalorder (%p247_p8), %s1776_s11, %s1776_s11 }
 0x506   :  { %1661 = vmatpush3.bf16.msra.mxu0 (%p247_p8), %v1660_v26 }
 0x507   :  { %1662 = vmatprep.subr.bf16.mxu0 (%p247_p8), %v1827_v25  ;;  %p1783_p12 = por (%p247_p8), %p1782_p11, %p1781_p10 }
 0x509   :  { %p1784_p13 = pnand (%p247_p8), %p1783_p12, %p1777_p9 }
 0x50a   :  { %1664 = vmatpush3.bf16.msra.mxu0 (%p247_p8), %v1663_v29 }
 0x50b   :  { %1665 = vmatprep.subr.bf16.mxu0 (%p247_p8), %v1827_v25 }
 0x50e   :  { %1667 = vmatpush3.bf16.msra.mxu0 (%p247_p8), %v1666_v0 }
 0x50f   : > { %v1749_v14 = vpop.eup %1748  ;;  %249 = sbr.rel (!%p247_p8) target bundleno = 255 (0xff), region = 69  ;;  %1668 = vmatprep.subr.bf16.mxu0 (%p247_p8), %v1827_v25 }
 0x510   : > { %v989_v16 = vmul.f32 %v1749_v14, %v988_v8 }
 0x512   : > { %v993_v17 = vadd.f32 %v992_v13, %v989_v16   ;;  %1670 = vmatpush3.bf16.msra.mxu0 (%p247_p8), %v1669_v61 }
 0x513   :  { %1671 = vmatprep.subr.bf16.mxu0 (%p247_p8), %v1827_v25 }
 0x514   : > { %v999_v20 = vsel %vm998_vm6, %v997_v32, %v993_v17  ;;  %v2260_v44 = vmov %v993_v17  ;;  %v1026_v37 = vrot.slane (%p247_p8), %v993_v17, 6 }
 0x515   : > { %1001 = vst [vmem:[%s1000_s26] sm:$0xff] %v999_v20 }
 0x516   :  { %1673 = vmatpush3.bf16.msra.mxu0 %v1672_v9 }
 0x517   :  { %1674 = vmatprep.subr.bf16.mxu0 %v1827_v25 }
 0x51a   :  { %1676 = vmatpush3.bf16.msra.mxu0 %v1675_v52 }
 0x51b   :  { %1677 = vmatprep.subr.bf16.mxu0 %v1827_v25 }
 0x51e   :  { %1679 = vmatpush3.bf16.msra.mxu0 %v1678_v27 }
 0x51f   :  { %1680 = vmatprep.subr.bf16.mxu0 %v1827_v25 }
 0x522   :  { %1682 = vmatpush3.bf16.msra.mxu0 %v1681_v36 }
 0x525   :  { %1433 = vmatmul.mubr.f32.vlgmr.msra.gmra.mrb[0].mxu0 %v1026_v37 }
 0x5f8   :  { %v1094_v46 = vpop.f32.mrb[0].mxu0 }
 0x5f9   :  { %v1095_v47 = vadd.f32 %v1155_v42, %v1094_v46  ;;  %v1434_v51 = vpop.f32.mrb[1].mxu0 }
 0x5fb   :  { %v1156_v58 = vmul.f32 -1.442695, %v1095_v47 }
 0x5fd   :  { %1750 = vpow2.f32 %v1156_v58 }
 0x607   :  { %v1751_v59 = vpop.eup %1750 }
 0x608   :  { %v1101_v3 = vadd.f32 1.0, %v1751_v59 }
 0x60a   :  { %1752 = vrcp.f32 %v1101_v3 }
 0x614   :  { %v1753_v30 = vpop.eup %1752 }
 0x615   :  { %1105 = vst.msk [vmem:[#allocation6] sm:$0x3] %vm1104_vm7, %v1753_v30 }
 0x616   :  { %1787 = shalt.err (!%p1784_p13)
}
 0x617   :  { %s1788_s12 = scalar_lea.hbm %s2259_s8, 32 }
 0x618   :  { %p1789_p0 = scmp.ne.s32.totalorder %s2259_s8, %s1788_s12  ;;  %p1792_p1 = scmp.lt.u32.totalorder %s1788_s12, %s2259_s8 }
 0x61a   :  { %p1794_p2 = pnand %p1792_p1, %p1789_p0 }
 0x61c   :  { %1797 = shalt.err (!%p1794_p2)
}
 0x61d   :  { %1117 = dma.vmem_to_hbm [thread:$0]  %s1115_s5, 32, %s2259_s8, [#allocation5]  }
 0x61e   :  { %1808 = dma.done.wait [#allocation5], 32  }
 0x61f   :  { %1809 = vsyncadd [#allocation5], 4294967264 }
 0x620   :  { %1123 = vsyncpa [#allocation4], 1 }
 0x621   :  { %1124 = vsyncpa [#allocation5], 1 }

</bundles_post_ra>
